<compile_context>
chip_gen: v5e
topology: v5e:2x2
jax: 0.10.0
libtpu: 0.0.40
codegen_flags: <defaults>
</compile_context>

<pallas_src>
import jax
import jax.numpy as jnp
from jax.experimental import pallas as pl
from jax.experimental.pallas import tpu as pltpu


def _second_order_cell_kernel(x_ref, h_ref, w2_ref, b1_ref, w2t_ref, b2_ref,
                              out_ref, hid_ref):
    """One batch tile per grid step; everything resident in VMEM.

    x_ref   : (tb, E)        input embedding tile
    h_ref   : (tb, H)        previous hidden tile
    w2_ref  : (H, E*H)       bilinear weight, W[o, i, j] stored at [j, i*H + o]
    b1_ref  : (1, H)         bilinear bias
    w2t_ref : (H, O)         h2o weight (pre-transposed)
    b2_ref  : (1, O)         h2o bias
    out_ref : (tb, O)        output tile
    hid_ref : (tb, H)        new hidden tile
    """
    x = x_ref[...]                                   # (tb, E)
    h = h_ref[...]                                   # (tb, H)

    E = x.shape[1]
    Ho = hid_ref.shape[1]

    # Step 1: contract over the hidden input j in ONE MXU matmul (K = H, N = E*H).
    #   u[b, i*Ho + o] = sum_j h[b, j] * W[o, i, j]
    u = jnp.dot(h, w2_ref[...], preferred_element_type=jnp.float32)   # (tb, E*Ho)

    # Step 2: weighted group-sum over the embedding index i on the VPU.
    #   bil[b, o] = sum_i x[b, i] * u[b, i*Ho + o]
    # Unrolled Python loop (E is small); static lane slices, no reshape needed.
    acc = x[:, 0:1] * u[:, 0:Ho]
    for i in range(1, E):
        acc = acc + x[:, i:i + 1] * u[:, i * Ho:(i + 1) * Ho]

    hidden = jnp.tanh(acc + b1_ref[...])             # (tb, Ho)
    hid_ref[...] = hidden.astype(hid_ref.dtype)

    # h2o Linear.
    out_ref[...] = (jnp.dot(hidden, w2t_ref[...], preferred_element_type=jnp.float32)
                    + b2_ref[...]).astype(out_ref.dtype)


def second_order_cell(data, last_hidden, w_bil, b_bil, w_h2o, b_h2o):
    """Pallas wrapper.  Shapes: data (B,E), last_hidden (B,H),
    w_bil (H,E,H) [= (out, in1, in2) as in nn.Bilinear], b_bil (H,),
    w_h2o (O,H), b_h2o (O,)."""
    B, E = data.shape
    H = last_hidden.shape[1]
    O = w_h2o.shape[0]
    EH = E * H
    f32 = jnp.float32

    # ---- Parameter plumbing (constants, no data-dependent compute) ----
    # W2[j, i*H + o] = W[o, i, j]  -> contract j on the MXU, loop i on the VPU.
    w2 = jnp.transpose(w_bil, (2, 1, 0)).reshape(H, EH).astype(f32)    # (H_in, E*H_out)
    b1 = b_bil.reshape(1, H).astype(f32)
    w2t = jnp.transpose(w_h2o, (1, 0)).astype(f32)                     # (H, O)
    b2 = b_h2o.reshape(1, O).astype(f32)

    # ---- Batch-tiled grid: one "parallel" axis (megacore-friendly on v7x) ----
    tb = B if B <= 128 else 128
    grid = (pl.cdiv(B, tb),)

    grid_spec = pltpu.PrefetchScalarGridSpec(
        num_scalar_prefetch=0,
        grid=grid,
        in_specs=[
            pl.BlockSpec((tb, E), lambda b: (b, 0)),     # data tile
            pl.BlockSpec((tb, H), lambda b: (b, 0)),     # last_hidden tile
            pl.BlockSpec((H, EH), lambda b: (0, 0)),     # bilinear weight (resident)
            pl.BlockSpec((1, H), lambda b: (0, 0)),      # bilinear bias
            pl.BlockSpec((H, O), lambda b: (0, 0)),      # h2o weight (transposed)
            pl.BlockSpec((1, O), lambda b: (0, 0)),      # h2o bias
        ],
        out_specs=[
            pl.BlockSpec((tb, O), lambda b: (b, 0)),     # output
            pl.BlockSpec((tb, H), lambda b: (b, 0)),     # hidden
        ],
    )

    out, hidden = pl.pallas_call(
        _second_order_cell_kernel,
        out_shape=(jax.ShapeDtypeStruct((B, O), f32),
                   jax.ShapeDtypeStruct((B, H), f32)),
        grid_spec=grid_spec,
        compiler_params=pltpu.CompilerParams(
            dimension_semantics=("parallel",)),
    )(data, last_hidden, w2, b1, w2t, b2)
    return out, hidden


def _reference(data, last_hidden, w_bil, b_bil, w_h2o, b_h2o):
    bil = jnp.einsum('bi,oij,bj->bo', data, w_bil, last_hidden) + b_bil[None, :]
    hidden = jnp.tanh(bil)
    out = hidden @ w_h2o.T + b_h2o[None, :]
    return out, hidden


if __name__ == "__main__":
    B, E, H, O = 2, 16, 32, 8  # batch, embed_size, hidden_size, output_size

    key = jax.random.PRNGKey(0)
    k1, k2, k3, k4, k5, k6 = jax.random.split(key, 6)

    # Deterministic synthetic parameters (shapes match nn.Bilinear / nn.Linear).
    bound_bil = 1.0 / (H ** 0.5)
    w_bil = jax.random.uniform(k1, (H, E, H), jnp.float32, -bound_bil, bound_bil)
    b_bil = jax.random.uniform(k2, (H,), jnp.float32, -bound_bil, bound_bil)
    bound_lin = 1.0 / (H ** 0.5)
    w_h2o = jax.random.uniform(k3, (O, H), jnp.float32, -bound_lin, bound_lin)
    b_h2o = jax.random.uniform(k4, (O,), jnp.float32, -bound_lin, bound_lin)

    # Inputs: data embedding and previous hidden state.
    data = jax.random.normal(k5, (B, E), jnp.float32)
    last_hidden = jax.random.normal(k6, (B, H), jnp.float32)

    out, hidden = second_order_cell(data, last_hidden, w_bil, b_bil, w_h2o, b_h2o)
    out, hidden = jax.block_until_ready((out, hidden))

    out_ref, hidden_ref = _reference(data, last_hidden, w_bil, b_bil, w_h2o, b_h2o)
    assert out.shape == (B, O) and hidden.shape == (B, H)
    assert jnp.allclose(out, out_ref, atol=1e-5, rtol=1e-5)
    assert jnp.allclose(hidden, hidden_ref, atol=1e-5, rtol=1e-5)

    print("KERNEL_OK")
</pallas_src>

<mosaic_0001>
module attributes {stable_mosaic.version = 11 : i64} {
  func.func @_second_order_cell_kernel(%arg0: i32, %arg1: memref<2x16xf32, #tpu.memory_space<vmem>>, %arg2: memref<2x32xf32, #tpu.memory_space<vmem>>, %arg3: memref<32x512xf32, #tpu.memory_space<vmem>>, %arg4: memref<1x32xf32, #tpu.memory_space<vmem>>, %arg5: memref<32x8xf32, #tpu.memory_space<vmem>>, %arg6: memref<1x8xf32, #tpu.memory_space<vmem>>, %arg7: memref<2x8xf32, #tpu.memory_space<vmem>>, %arg8: memref<2x32xf32, #tpu.memory_space<vmem>>) attributes {dimension_semantics = [#tpu.dimension_semantics<parallel>], iteration_bounds = array<i64: 1>, scalar_prefetch = 0 : i64, scratch_operands = 0 : i64, tpu.core_type = #tpu.core_type<tc>, window_params = [{transform_indices = @transform_0, window_bounds = array<i64: 2, 16>}, {transform_indices = @transform_1, window_bounds = array<i64: 2, 32>}, {pipeline_mode = #tpu.pipeline_mode<synchronous>, transform_indices = @transform_2, window_bounds = array<i64: 32, 512>}, {pipeline_mode = #tpu.pipeline_mode<synchronous>, transform_indices = @transform_3, window_bounds = array<i64: 1, 32>}, {pipeline_mode = #tpu.pipeline_mode<synchronous>, transform_indices = @transform_4, window_bounds = array<i64: 32, 8>}, {pipeline_mode = #tpu.pipeline_mode<synchronous>, transform_indices = @transform_5, window_bounds = array<i64: 1, 8>}, {transform_indices = @transform_6, window_bounds = array<i64: 2, 8>}, {transform_indices = @transform_7, window_bounds = array<i64: 2, 32>}]} {
    %c0 = arith.constant 0 : index
    %c0_0 = arith.constant 0 : index
    %0 = vector.load %arg1[%c0, %c0_0] : memref<2x16xf32, #tpu.memory_space<vmem>>, vector<2x16xf32>
    %c0_1 = arith.constant 0 : index
    %c0_2 = arith.constant 0 : index
    %1 = vector.load %arg2[%c0_1, %c0_2] : memref<2x32xf32, #tpu.memory_space<vmem>>, vector<2x32xf32>
    %c0_3 = arith.constant 0 : index
    %c0_4 = arith.constant 0 : index
    %2 = vector.load %arg3[%c0_3, %c0_4] : memref<32x512xf32, #tpu.memory_space<vmem>>, vector<32x512xf32>
    %cst = arith.constant dense<0.000000e+00> : vector<2x512xf32>
    %3 = tpu.matmul %1, %2, %cst {dimension_numbers = #tpu.dot_dimension_numbers<[1], [0], [0], [1], [0, 0, 1, 1], [], []>} : vector<2x32xf32>, vector<32x512xf32>, vector<2x512xf32> -> vector<2x512xf32>
    %4 = vector.extract_strided_slice %0 {offsets = [0, 0], sizes = [2, 1], strides = [1, 1]} : vector<2x16xf32> to vector<2x1xf32>
    %5 = vector.extract_strided_slice %3 {offsets = [0, 0], sizes = [2, 32], strides = [1, 1]} : vector<2x512xf32> to vector<2x32xf32>
    %6 = vector.broadcast %4 : vector<2x1xf32> to vector<2x32xf32>
    %7 = arith.mulf %6, %5 : vector<2x32xf32>
    %8 = vector.extract_strided_slice %0 {offsets = [0, 1], sizes = [2, 1], strides = [1, 1]} : vector<2x16xf32> to vector<2x1xf32>
    %9 = vector.extract_strided_slice %3 {offsets = [0, 32], sizes = [2, 32], strides = [1, 1]} : vector<2x512xf32> to vector<2x32xf32>
    %10 = vector.broadcast %8 : vector<2x1xf32> to vector<2x32xf32>
    %11 = arith.mulf %10, %9 : vector<2x32xf32>
    %12 = arith.addf %7, %11 : vector<2x32xf32>
    %13 = vector.extract_strided_slice %0 {offsets = [0, 2], sizes = [2, 1], strides = [1, 1]} : vector<2x16xf32> to vector<2x1xf32>
    %14 = vector.extract_strided_slice %3 {offsets = [0, 64], sizes = [2, 32], strides = [1, 1]} : vector<2x512xf32> to vector<2x32xf32>
    %15 = vector.broadcast %13 : vector<2x1xf32> to vector<2x32xf32>
    %16 = arith.mulf %15, %14 : vector<2x32xf32>
    %17 = arith.addf %12, %16 : vector<2x32xf32>
    %18 = vector.extract_strided_slice %0 {offsets = [0, 3], sizes = [2, 1], strides = [1, 1]} : vector<2x16xf32> to vector<2x1xf32>
    %19 = vector.extract_strided_slice %3 {offsets = [0, 96], sizes = [2, 32], strides = [1, 1]} : vector<2x512xf32> to vector<2x32xf32>
    %20 = vector.broadcast %18 : vector<2x1xf32> to vector<2x32xf32>
    %21 = arith.mulf %20, %19 : vector<2x32xf32>
    %22 = arith.addf %17, %21 : vector<2x32xf32>
    %23 = vector.extract_strided_slice %0 {offsets = [0, 4], sizes = [2, 1], strides = [1, 1]} : vector<2x16xf32> to vector<2x1xf32>
    %24 = vector.extract_strided_slice %3 {offsets = [0, 128], sizes = [2, 32], strides = [1, 1]} : vector<2x512xf32> to vector<2x32xf32>
    %25 = vector.broadcast %23 : vector<2x1xf32> to vector<2x32xf32>
    %26 = arith.mulf %25, %24 : vector<2x32xf32>
    %27 = arith.addf %22, %26 : vector<2x32xf32>
    %28 = vector.extract_strided_slice %0 {offsets = [0, 5], sizes = [2, 1], strides = [1, 1]} : vector<2x16xf32> to vector<2x1xf32>
    %29 = vector.extract_strided_slice %3 {offsets = [0, 160], sizes = [2, 32], strides = [1, 1]} : vector<2x512xf32> to vector<2x32xf32>
    %30 = vector.broadcast %28 : vector<2x1xf32> to vector<2x32xf32>
    %31 = arith.mulf %30, %29 : vector<2x32xf32>
    %32 = arith.addf %27, %31 : vector<2x32xf32>
    %33 = vector.extract_strided_slice %0 {offsets = [0, 6], sizes = [2, 1], strides = [1, 1]} : vector<2x16xf32> to vector<2x1xf32>
    %34 = vector.extract_strided_slice %3 {offsets = [0, 192], sizes = [2, 32], strides = [1, 1]} : vector<2x512xf32> to vector<2x32xf32>
    %35 = vector.broadcast %33 : vector<2x1xf32> to vector<2x32xf32>
    %36 = arith.mulf %35, %34 : vector<2x32xf32>
    %37 = arith.addf %32, %36 : vector<2x32xf32>
    %38 = vector.extract_strided_slice %0 {offsets = [0, 7], sizes = [2, 1], strides = [1, 1]} : vector<2x16xf32> to vector<2x1xf32>
    %39 = vector.extract_strided_slice %3 {offsets = [0, 224], sizes = [2, 32], strides = [1, 1]} : vector<2x512xf32> to vector<2x32xf32>
    %40 = vector.broadcast %38 : vector<2x1xf32> to vector<2x32xf32>
    %41 = arith.mulf %40, %39 : vector<2x32xf32>
    %42 = arith.addf %37, %41 : vector<2x32xf32>
    %43 = vector.extract_strided_slice %0 {offsets = [0, 8], sizes = [2, 1], strides = [1, 1]} : vector<2x16xf32> to vector<2x1xf32>
    %44 = vector.extract_strided_slice %3 {offsets = [0, 256], sizes = [2, 32], strides = [1, 1]} : vector<2x512xf32> to vector<2x32xf32>
    %45 = vector.broadcast %43 : vector<2x1xf32> to vector<2x32xf32>
    %46 = arith.mulf %45, %44 : vector<2x32xf32>
    %47 = arith.addf %42, %46 : vector<2x32xf32>
    %48 = vector.extract_strided_slice %0 {offsets = [0, 9], sizes = [2, 1], strides = [1, 1]} : vector<2x16xf32> to vector<2x1xf32>
    %49 = vector.extract_strided_slice %3 {offsets = [0, 288], sizes = [2, 32], strides = [1, 1]} : vector<2x512xf32> to vector<2x32xf32>
    %50 = vector.broadcast %48 : vector<2x1xf32> to vector<2x32xf32>
    %51 = arith.mulf %50, %49 : vector<2x32xf32>
    %52 = arith.addf %47, %51 : vector<2x32xf32>
    %53 = vector.extract_strided_slice %0 {offsets = [0, 10], sizes = [2, 1], strides = [1, 1]} : vector<2x16xf32> to vector<2x1xf32>
    %54 = vector.extract_strided_slice %3 {offsets = [0, 320], sizes = [2, 32], strides = [1, 1]} : vector<2x512xf32> to vector<2x32xf32>
    %55 = vector.broadcast %53 : vector<2x1xf32> to vector<2x32xf32>
    %56 = arith.mulf %55, %54 : vector<2x32xf32>
    %57 = arith.addf %52, %56 : vector<2x32xf32>
    %58 = vector.extract_strided_slice %0 {offsets = [0, 11], sizes = [2, 1], strides = [1, 1]} : vector<2x16xf32> to vector<2x1xf32>
    %59 = vector.extract_strided_slice %3 {offsets = [0, 352], sizes = [2, 32], strides = [1, 1]} : vector<2x512xf32> to vector<2x32xf32>
    %60 = vector.broadcast %58 : vector<2x1xf32> to vector<2x32xf32>
    %61 = arith.mulf %60, %59 : vector<2x32xf32>
    %62 = arith.addf %57, %61 : vector<2x32xf32>
    %63 = vector.extract_strided_slice %0 {offsets = [0, 12], sizes = [2, 1], strides = [1, 1]} : vector<2x16xf32> to vector<2x1xf32>
    %64 = vector.extract_strided_slice %3 {offsets = [0, 384], sizes = [2, 32], strides = [1, 1]} : vector<2x512xf32> to vector<2x32xf32>
    %65 = vector.broadcast %63 : vector<2x1xf32> to vector<2x32xf32>
    %66 = arith.mulf %65, %64 : vector<2x32xf32>
    %67 = arith.addf %62, %66 : vector<2x32xf32>
    %68 = vector.extract_strided_slice %0 {offsets = [0, 13], sizes = [2, 1], strides = [1, 1]} : vector<2x16xf32> to vector<2x1xf32>
    %69 = vector.extract_strided_slice %3 {offsets = [0, 416], sizes = [2, 32], strides = [1, 1]} : vector<2x512xf32> to vector<2x32xf32>
    %70 = vector.broadcast %68 : vector<2x1xf32> to vector<2x32xf32>
    %71 = arith.mulf %70, %69 : vector<2x32xf32>
    %72 = arith.addf %67, %71 : vector<2x32xf32>
    %73 = vector.extract_strided_slice %0 {offsets = [0, 14], sizes = [2, 1], strides = [1, 1]} : vector<2x16xf32> to vector<2x1xf32>
    %74 = vector.extract_strided_slice %3 {offsets = [0, 448], sizes = [2, 32], strides = [1, 1]} : vector<2x512xf32> to vector<2x32xf32>
    %75 = vector.broadcast %73 : vector<2x1xf32> to vector<2x32xf32>
    %76 = arith.mulf %75, %74 : vector<2x32xf32>
    %77 = arith.addf %72, %76 : vector<2x32xf32>
    %78 = vector.extract_strided_slice %0 {offsets = [0, 15], sizes = [2, 1], strides = [1, 1]} : vector<2x16xf32> to vector<2x1xf32>
    %79 = vector.extract_strided_slice %3 {offsets = [0, 480], sizes = [2, 32], strides = [1, 1]} : vector<2x512xf32> to vector<2x32xf32>
    %80 = vector.broadcast %78 : vector<2x1xf32> to vector<2x32xf32>
    %81 = arith.mulf %80, %79 : vector<2x32xf32>
    %82 = arith.addf %77, %81 : vector<2x32xf32>
    %c0_5 = arith.constant 0 : index
    %c0_6 = arith.constant 0 : index
    %83 = vector.load %arg4[%c0_5, %c0_6] : memref<1x32xf32, #tpu.memory_space<vmem>>, vector<1x32xf32>
    %84 = vector.broadcast %83 : vector<1x32xf32> to vector<2x32xf32>
    %85 = arith.addf %82, %84 : vector<2x32xf32>
    %86 = math.tanh %85 : vector<2x32xf32>
    %c0_7 = arith.constant 0 : index
    %c0_8 = arith.constant 0 : index
    %87 = vector.load %arg8[%c0_7, %c0_8] : memref<2x32xf32, #tpu.memory_space<vmem>>, vector<2x32xf32>
    tpu.vector_store %arg8[%c0_7, %c0_8], %86 {strides = array<i32>} : memref<2x32xf32, #tpu.memory_space<vmem>>, vector<2x32xf32>,
    %c0_9 = arith.constant 0 : index
    %c0_10 = arith.constant 0 : index
    %88 = vector.load %arg5[%c0_9, %c0_10] : memref<32x8xf32, #tpu.memory_space<vmem>>, vector<32x8xf32>
    %cst_11 = arith.constant dense<0.000000e+00> : vector<2x8xf32>
    %89 = tpu.matmul %86, %88, %cst_11 {dimension_numbers = #tpu.dot_dimension_numbers<[1], [0], [0], [1], [0, 0, 1, 1], [], []>} : vector<2x32xf32>, vector<32x8xf32>, vector<2x8xf32> -> vector<2x8xf32>
    %c0_12 = arith.constant 0 : index
    %c0_13 = arith.constant 0 : index
    %90 = vector.load %arg6[%c0_12, %c0_13] : memref<1x8xf32, #tpu.memory_space<vmem>>, vector<1x8xf32>
    %91 = vector.broadcast %90 : vector<1x8xf32> to vector<2x8xf32>
    %92 = arith.addf %89, %91 : vector<2x8xf32>
    %c0_14 = arith.constant 0 : index
    %c0_15 = arith.constant 0 : index
    %93 = vector.load %arg7[%c0_14, %c0_15] : memref<2x8xf32, #tpu.memory_space<vmem>>, vector<2x8xf32>
    tpu.vector_store %arg7[%c0_14, %c0_15], %92 {strides = array<i32>} : memref<2x8xf32, #tpu.memory_space<vmem>>, vector<2x8xf32>,
    return
  }
  func.func @transform_0(%arg0: i32) -> (i32, i32) {
    %c0_i32 = arith.constant 0 : i32
    %c0_i32_0 = arith.constant 0 : i32
    return %arg0, %c0_i32 : i32, i32
  }
  func.func @transform_1(%arg0: i32) -> (i32, i32) {
    %c0_i32 = arith.constant 0 : i32
    %c0_i32_0 = arith.constant 0 : i32
    return %arg0, %c0_i32 : i32, i32
  }
  func.func @transform_2(%arg0: i32) -> (i32, i32) {
    %c0_i32 = arith.constant 0 : i32
    %c0_i32_0 = arith.constant 0 : i32
    %c0_i32_1 = arith.constant 0 : i32
    return %c0_i32, %c0_i32_0 : i32, i32
  }
  func.func @transform_3(%arg0: i32) -> (i32, i32) {
    %c0_i32 = arith.constant 0 : i32
    %c0_i32_0 = arith.constant 0 : i32
    %c0_i32_1 = arith.constant 0 : i32
    return %c0_i32, %c0_i32_0 : i32, i32
  }
  func.func @transform_4(%arg0: i32) -> (i32, i32) {
    %c0_i32 = arith.constant 0 : i32
    %c0_i32_0 = arith.constant 0 : i32
    %c0_i32_1 = arith.constant 0 : i32
    return %c0_i32, %c0_i32_0 : i32, i32
  }
  func.func @transform_5(%arg0: i32) -> (i32, i32) {
    %c0_i32 = arith.constant 0 : i32
    %c0_i32_0 = arith.constant 0 : i32
    %c0_i32_1 = arith.constant 0 : i32
    return %c0_i32, %c0_i32_0 : i32, i32
  }
  func.func @transform_6(%arg0: i32) -> (i32, i32) {
    %c0_i32 = arith.constant 0 : i32
    %c0_i32_0 = arith.constant 0 : i32
    return %arg0, %c0_i32 : i32, i32
  }
  func.func @transform_7(%arg0: i32) -> (i32, i32) {
    %c0_i32 = arith.constant 0 : i32
    %c0_i32_0 = arith.constant 0 : i32
    return %arg0, %c0_i32 : i32, i32
  }
}

</mosaic_0001>

<bundles_post_ra>
// kernel: tpu_custom_call.1
= control target key start
LH: loop header
LB: loop body
LE: loop exit
PB: predicated region body
PF: predicated region fallthrough
CT: control target
= control target key end

     0   :  { %13 = vsyncpa [#allocation3], 0  ;;  %s618_s0 = inlined_call_operand.vmem [shape: f32[2,16], index: 0, kind: input, shape index: {}]   ;;  %s619_s1 = inlined_call_operand.vmem [shape: f32[2,32], index: 1, kind: input, shape index: {}]   ;;  %s620_s2 = inlined_call_operand.hbm [shape: f32[32,512], index: 2, kind: input, shape index: {}]   ;;  %s621_s3 = inlined_call_operand.vmem [shape: f32[1,32], index: 3, kind: input, shape index: {}]   ;;  %s622_s4 = inlined_call_operand.vmem [shape: f32[32,8], index: 4, kind: input, shape index: {}]   ;;  %s623_s5 = inlined_call_operand.vmem [shape: f32[1,8], index: 5, kind: input, shape index: {}]   ;;  %s624_s6 = inlined_call_operand.hbm [shape: f32[2,8], index: 6, kind: output, shape index: {0}]   ;;  %s625_s7 = inlined_call_operand.hbm [shape: f32[2,32], index: 7, kind: output, shape index: {1}]  }
   0x1   :  { %14 = vsyncpa [#allocation4], 0 }
   0x2   :  { %15 = vsyncpa [#allocation7], 0  ;;  %s24_s26 = sshll.u32 %s620_s2, 4  ;;  %s490_s27 = smov [#allocation2]   ;;  %s25_s26 = int_to_ptr.hbm [resolvable:$true] %s24_s26 }
   0x3   :  { %s26_s28 = sshll.u32 %s490_s27, 4  ;;  %s491_s29 = smov 512   ;;  %s27_s28 = int_to_ptr.vmem [resolvable:$true] %s26_s28 }
   0x4   :  { %s492_s30 = smov 32  }
   0x5   :  { %32 = dma.hbm_to_vmem [thread:$0]  %s25_s26, 2048, %s27_s28, [#allocation3], %s491_s29, %s491_s29, %s492_s30  }
   0x6   :  { %484 = dma.done.wait [#allocation3], 2048  }
   0x7   :  { %485 = vsyncadd [#allocation3], 4294965248  ;;  %v493_v0 = vmov 6   ;;  %v494_v1 = vmov 1   ;;  %v495_v2 = vmov 3   ;;  %v57_v3 = vld [vmem:[#allocation2 + $0x60] sm:$0xff] }
   0x8   :  { %395 = vset.pattern.permute.xlu2 %v493_v0  ;;  %391 = vset.pattern.permute.xlu0 %v494_v1  ;;  %v53_v4 = vld [vmem:[#allocation2 + $0x40] sm:$0xff]  ;;  %v58_v5 = vld [vmem:[#allocation2 + $0x68] sm:$0xff]  ;;  %v59_v10 = vld [vmem:[#allocation2 + $0x70] sm:$0xff]  ;;  %vm61_vm0 = vcmask 261120   ;;  %v496_v19 = vmov 7   ;;  %v497_v21 = vmov 2  }
   0x9   :  { %393 = vset.pattern.permute.xlu1 %v495_v2  ;;  %77 = vmatpush.msra.mxu0 %v57_v3  ;;  %v560_v6 = vld [vmem:[%s618_s0] sm:$0x3]  ;;  %v54_v8 = vld [vmem:[#allocation2 + $0x48] sm:$0xff]  ;;  %v55_v11 = vld [vmem:[#allocation2 + $0x50] sm:$0xff]  ;;  %v498_v22 = vmov 5   ;;  %v499_v24 = vmov 10  }
   0xa   :  { %v49_v7 = vld [vmem:[#allocation2 + $0x20] sm:$0xff]  ;;  %97 = vmatpush.msra.mxu1 %v58_v5  ;;  %198 = vperm.xlu2 %395, %v560_v6   ;;  %v50_v9 = vld [vmem:[#allocation2 + $0x28] sm:$0xff]  ;;  %v60_v13 = vld [vmem:[#allocation2 + $0x78] sm:$0xff]  ;;  %v500_v25 = vmov 11   ;;  %v501_v26 = vmov 9   ;;  %v502_v27 = vmov 14  }
   0xb   :  { %78 = vmatpush.msra.mxu0 %v53_v4  ;;  %152 = vperm.xlu0 %391, %v560_v6   ;;  %v45_v12 = vld [vmem:[#allocation2] sm:$0xff]  ;;  %v46_v15 = vld [vmem:[#allocation2 + $0x8] sm:$0xff]  ;;  %v51_v16 = vld [vmem:[#allocation2 + $0x30] sm:$0xff]  ;;  %v503_v28 = vmov 13   ;;  %v504_v29 = vmov 0   ;;  %v505_v30 = vmov 15  }
   0xc   :  { %98 = vmatpush.msra.mxu1 %v54_v8  ;;  %117 = vmatpush.msra.mxu2 %v59_v10  ;;  %v44_v14 = vld [vmem:[%s619_s1] sm:$0x3]  ;;  %v56_v17 = vld [vmem:[#allocation2 + $0x58] sm:$0xff]  ;;  %v47_v18 = vld [vmem:[#allocation2 + $0x10] sm:$0xff]  ;;  %v506_v31 = vmov 8   ;;  %v507_v32 = vmov 4  }
   0xd   :  { %79 = vmatpush.msra.mxu0 %v49_v7  ;;  %172 = vperm.xlu1 %393, %v560_v6   ;;  %v52_v20 = vld [vmem:[#allocation2 + $0x38] sm:$0xff]  ;;  %s508_s0 = smov 96   ;;  %s509_s1 = smov 64   ;;  %v510_v53 = vmov 12   ;;  %vm295_vm1 = vcmask 254976   ;;  %vm328_vm2 = vcmask 58368  }
   0xe   :  { %99 = vmatpush.msra.mxu1 %v50_v9  ;;  %118 = vmatpush.msra.mxu2 %v55_v11  ;;  %v48_v23 = vld [vmem:[#allocation2 + $0x18] sm:$0xff]  ;;  %s348_s24 = sshll.u32 %s625_s7, 4  ;;  %s512_s26 = smov [#allocation5]   ;;  %s349_s24 = int_to_ptr.hbm [resolvable:$true] %s348_s24 }
   0xf   :  { %80 = vmatpush.msra.mxu0 %v45_v12  ;;  %137 = vmatpush.msra.mxu3 %v60_v13  ;;  %v300_v12 = vld [vmem:[%s622_s4 + $0x18] sm:$0xff]  ;;  %s335_s27 = sshll.u32 %s512_s26, 4  ;;  %s336_s27 = int_to_ptr.vmem [resolvable:$true] %s335_s27 }
  0x10   :  { %363 = vmatmul.msk.f32.vlgmr.msra.gmra.mxu0 %vm61_vm0, %v44_v14  ;;  %100 = vmatpush.msra.mxu1 %v46_v15 }
  0x11   :  { %364 = vmatmul.msk.f32.vlgmr.msra.gmra.mxu1 %vm61_vm0, %v44_v14  ;;  %119 = vmatpush.msra.mxu2 %v51_v16  ;;  %v298_v16 = vld [vmem:[%s622_s4 + $0x8] sm:$0xff] }
  0x12   :  { %396 = vset.pattern.permute.xlu2 %v496_v19  ;;  %138 = vmatpush.msra.mxu3 %v56_v17 }
  0x13   :  { %208 = vperm.xlu2 %396, %v560_v6   ;;  %120 = vmatpush.msra.mxu2 %v47_v18  ;;  %v297_v18 = vld [vmem:[%s622_s4] sm:$0xff] }
  0x14   :  { %365 = vmatmul.msk.f32.vlgmr.msra.gmra.mxu2 %vm61_vm0, %v44_v14  ;;  %392 = vset.pattern.permute.xlu0 %v497_v21 }
  0x15   :  { %162 = vperm.xlu0 %392, %v560_v6   ;;  %394 = vset.pattern.permute.xlu1 %v498_v22 }
  0x16   :  { %188 = vperm.xlu1 %394, %v560_v6   ;;  %139 = vmatpush.msra.mxu3 %v52_v20 }
  0x17   :  { %320 = vmatpush.msrb.mxu0 %v300_v12 }
  0x18   :  { %140 = vmatpush.msra.mxu3 %v48_v23 }
  0x19   :  { %366 = vmatmul.msk.f32.vlgmr.msra.gmra.mxu3 %vm61_vm0, %v44_v14  ;;  %v299_v14 = vld [vmem:[%s622_s4 + $0x10] sm:$0xff]  ;;  %s511_s4 = smov [#allocation6]  }
  0x1a   :  { %321 = vmatpush.msrb.mxu0 %v299_v14  ;;  %s346_s21 = sshll.u32 %s511_s4, 4  ;;  %s347_s21 = int_to_ptr.vmem [resolvable:$true] %s346_s21 }
  0x1b   :  { %398 = vset.pattern.permute.xlu2 %v499_v24 }
  0x1c   :  { %234 = vperm.xlu2 %398, %v560_v6   ;;  %322 = vmatpush.msrb.mxu0 %v298_v16 }
  0x1d   :  { %399 = vset.pattern.permute.xlu0 %v500_v25 }
  0x1e   :  { %397 = vset.pattern.permute.xlu1 %v501_v26  ;;  %244 = vperm.xlu0 %399, %v560_v6  }
  0x1f   :  { %224 = vperm.xlu1 %397, %v560_v6   ;;  %323 = vmatpush.msrb.mxu0 %v297_v18 }
  0x24   :  { %401 = vset.pattern.permute.xlu2 %v502_v27 }
  0x25   :  { %270 = vperm.xlu2 %401, %v560_v6  }
  0x26   :  { %404 = vset.pattern.permute.xlu0 %v507_v32 }
  0x27   :  { %400 = vset.pattern.permute.xlu1 %v503_v28 }
  0x28   :  { %260 = vperm.xlu1 %400, %v560_v6  }
  0x2d   :  { %403 = vset.pattern.permute.xlu2 %v504_v29 }
  0x2e   :  { %147 = vperm.xlu2 %403, %v560_v6  }
  0x30   :  { %402 = vset.pattern.permute.xlu1 %v505_v30 }
  0x31   :  { %280 = vperm.xlu1 %402, %v560_v6  }
  0x36   :  { %405 = vset.pattern.permute.xlu2 %v506_v31 }
  0x37   :  { %218 = vperm.xlu2 %405, %v560_v6  }
  0x64   :  { %v199_v34 = vpop.permute.xlu2 %198 }
  0x6d   :  { %v209_v38 = vpop.permute.xlu2 %208 }
  0x76   :  { %v235_v46 = vpop.permute.xlu2 %234 }
  0x7d   :  { %v153_v33 = vpop.permute.xlu0 %152 }
  0x7f   :  { %v173_v35 = vpop.permute.xlu1 %172  ;;  %v271_v55 = vpop.permute.xlu2 %270 }
  0x87   :  { %v163_v36 = vpop.permute.xlu0 %162 }
  0x88   :  { %v189_v42 = vpop.permute.xlu1 %188  ;;  %v148_v62 = vpop.permute.xlu2 %147 }
  0x8d   :  { %v82_v37 = vpop.f32.mrf.mxu0 }
  0x8e   :  { %v165_v39 = vmul.f32 %v163_v36, %v82_v37  ;;  %v175_v40 = vmul.f32 %v173_v35, %v82_v37  ;;  %v155_v41 = vmul.f32 %v153_v33, %v82_v37  ;;  %v102_v43 = vpop.f32.mrf.mxu1  ;;  %v150_v0 = vmul.f32 %v148_v62, %v82_v37 }
  0x8f   :  { %v191_v44 = vmul.f32 %v189_v42, %v102_v43  ;;  %v201_v45 = vmul.f32 %v199_v34, %v102_v43  ;;  %v211_v52 = vmul.f32 %v209_v38, %v102_v43  ;;  %v408_v34 = vld [vmem:[%s621_s3] ss:$0 sm:$0xff] }
  0x90   :  { %177 = vrot.lane.b32.xlu2 %v175_v40, %s492_s30  ;;  %157 = vrot.lane.b32.xlu0 %v155_v41, %s508_s0  ;;  %v245_v47 = vpop.permute.xlu0 %244  ;;  %v409_v40 = vld [vmem:[%s623_s5] ss:$0 sm:$0xff] }
  0x91   :  { %167 = vrot.lane.b32.xlu1 %v165_v39, %s509_s1  ;;  %v225_v49 = vpop.permute.xlu1 %224  ;;  %v219_v63 = vpop.permute.xlu2 %218 }
  0x97   :  { %v122_v48 = vpop.f32.mrf.mxu2 }
  0x98   :  { %203 = vrot.lane.b32.xlu2 %v201_v45, %s509_s1  ;;  %182 = vperm.xlu0 %404, %v560_v6   ;;  %v227_v50 = vmul.f32 %v225_v49, %v122_v48  ;;  %v247_v51 = vmul.f32 %v245_v47, %v122_v48  ;;  %v237_v57 = vmul.f32 %v235_v46, %v122_v48 }
  0x99   :  { %193 = vrot.lane.b32.xlu1 %v191_v44, %s508_s0  ;;  %v221_v19 = vmul.f32 %v219_v63, %v122_v48 }
  0x9a   :  { %v261_v58 = vpop.permute.xlu1 %260 }
  0x9c   :  { %v142_v54 = vpop.f32.mrf.mxu3 }
  0x9d   :  { %v273_v56 = vmul.f32 %v271_v55, %v142_v54  ;;  %v263_v59 = vmul.f32 %v261_v58, %v142_v54 }
  0xa0   :  { %229 = vrot.lane.b32.xlu0 %v227_v50, %s508_s0  ;;  %249 = vrot.lane.b32.xlu2 %v247_v51, %s492_s30 }
  0xa1   :  { %213 = vrot.lane.b32.xlu1 %v211_v52, %s492_s30  ;;  %406 = vset.pattern.permute.xlu0 %v510_v53 }
  0xa3   :  { %v281_v60 = vpop.permute.xlu1 %280 }
  0xa4   :  { %v283_v61 = vmul.f32 %v281_v60, %v142_v54 }
  0xa8   :  { %254 = vperm.xlu0 %406, %v560_v6   ;;  %275 = vrot.lane.b32.xlu2 %v273_v56, %s509_s1 }
  0xa9   :  { %239 = vrot.lane.b32.xlu1 %v237_v57, %s509_s1 }
  0xb0   :  { %407 = vset.pattern.permute.xlu0 %v505_v30 }
  0xb1   :  { %265 = vrot.lane.b32.xlu1 %v263_v59, %s508_s0 }
  0xb9   :  { %285 = vrot.lane.b32.xlu1 %v283_v61, %s492_s30  ;;  %s337_s30 = sshll.u32 %s624_s6, 4  ;;  %s338_s30 = int_to_ptr.hbm [resolvable:$true] %s337_s30 }
  0xea   :  { %v178_v4 = vpop.permute.xlu2 %177 }
  0xf2   :  { %v204_v13 = vpop.permute.xlu2 %203 }
  0xfa   :  { %v250_v26 = vpop.permute.xlu2 %249 }
 0x102   :  { %v158_v1 = vpop.permute.xlu0 %157  ;;  %v276_v33 = vpop.permute.xlu2 %275 }
 0x103   :  { %v168_v2 = vpop.permute.xlu1 %167  ;;  %v160_v3 = vadd.f32 %v158_v1, %v150_v0 }
 0x105   :  { %v170_v5 = vadd.f32 %v168_v2, %v160_v3 }
 0x107   :  { %v180_v8 = vadd.f32 %v178_v4, %v170_v5 }
 0x10a   :  { %v183_v6 = vpop.permute.xlu0 %182 }
 0x10b   :  { %v194_v7 = vpop.permute.xlu1 %193  ;;  %v185_v9 = vmul.f32 %v183_v6, %v102_v43 }
 0x10d   :  { %v186_v10 = vadd.f32 %v185_v9, %v180_v8 }
 0x10f   :  { %v196_v11 = vadd.f32 %v194_v7, %v186_v10 }
 0x111   :  { %v206_v15 = vadd.f32 %v204_v13, %v196_v11 }
 0x112   :  { %v230_v21 = vpop.permute.xlu0 %229 }
 0x113   :  { %v214_v17 = vpop.permute.xlu1 %213 }
 0x114   :  { %v216_v20 = vadd.f32 %v214_v17, %v206_v15 }
 0x116   :  { %v222_v22 = vadd.f32 %v221_v19, %v216_v20 }
 0x118   :  { %v232_v23 = vadd.f32 %v230_v21, %v222_v22 }
 0x11a   :  { %v255_v27 = vpop.permute.xlu0 %254 }
 0x11b   :  { %v240_v24 = vpop.permute.xlu1 %239  ;;  %v257_v29 = vmul.f32 %v255_v27, %v142_v54 }
 0x11c   :  { %v242_v25 = vadd.f32 %v240_v24, %v232_v23 }
 0x11e   :  { %v252_v28 = vadd.f32 %v250_v26, %v242_v25 }
 0x120   :  { %v258_v31 = vadd.f32 %v257_v29, %v252_v28 }
 0x123   :  { %v266_v30 = vpop.permute.xlu1 %265 }
 0x124   :  { %v268_v32 = vadd.f32 %v266_v30, %v258_v31 }
 0x126   :  { %v278_v35 = vadd.f32 %v276_v33, %v268_v32 }
 0x12b   :  { %v286_v36 = vpop.permute.xlu1 %285 }
 0x12c   :  { %v288_v37 = vadd.f32 %v286_v36, %v278_v35 }
 0x12e   :  { %v293_v38 = vadd.f32 %v408_v34, %v288_v37 }
 0x130   :  { %410 = vtanh.f32 %v293_v38 }
 0x136   :  { %v411_v39 = vpop.eup %410 }
 0x137   :  { %367 = vmatmul.msk.f32.vlgmr.msrb.gmra.mxu0 %vm61_vm0, %v411_v39  ;;  %296 = vst.msk [vmem:[#allocation6] sm:$0x3] %vm295_vm1, %v411_v39 }
 0x138   :  { %351 = dma.vmem_to_hbm [thread:$0]  %s347_s21, 32, %s349_s24, [#allocation7]  }
 0x1b4   :  { %v325_v41 = vpop.f32.mrf.mxu0 }
 0x1b5   :  { %v326_v42 = vadd.f32 %v409_v40, %v325_v41 }
 0x1b7   :  { %329 = vst.msk [vmem:[#allocation5] sm:$0x3] %vm328_vm2, %v326_v42 }
 0x1b8   :  { %340 = dma.vmem_to_hbm [thread:$0]  %s336_s27, 32, %s338_s30, [#allocation4]  }
 0x1b9   :  { %486 = dma.done.wait [#allocation4], 32  }
 0x1ba   :  { %487 = vsyncadd [#allocation4], 4294967264 }
 0x1bb   :  { %488 = dma.done.wait [#allocation7], 32  }
 0x1bc   :  { %489 = vsyncadd [#allocation7], 4294967264 }
 0x1bd   :  { %360 = vsyncpa [#allocation3], 1 }
 0x1be   :  { %361 = vsyncpa [#allocation4], 1 }
 0x1bf   :  { %362 = vsyncpa [#allocation7], 1 }

</bundles_post_ra>
